<compile_context>
chip_gen: v7x
topology: tpu7x:2x2x1
jax: 0.10.0
libtpu: 0.0.40
codegen_flags: <defaults>
</compile_context>

<pallas_src>
import functools

import numpy as np
import jax
import jax.numpy as jnp
from jax import lax
from jax.experimental import pallas as pl
from jax.experimental.pallas import tpu as pltpu

_EPS = 1e-8                      # GIoU division guard (original torch code has none -> NaN on degenerate boxes)
_MAX_TILE_ROWS = 8192            # lane-padded VMEM per sim buffer <= 8192*128*4 = 4 MiB (x2 pipeline buffers)
_TARGET_BLOCK_BYTES = 4 << 20    # target HBM bytes per sim block


def _round_up(x, m):
    return ((x + m - 1) // m) * m


def _bucket_matches(m):
    """Static pad size for the matched-query axis (bucketed to limit jit recompiles)."""
    m = max(int(m), 1)
    if m <= 64:
        return _round_up(m, 8)
    return 1 << (m - 1).bit_length()


def _recip(x):
    """Approx EUP reciprocal + one Newton step: stays off the divide path, ~f32 accuracy."""
    r = pl.reciprocal(x, approx=True)
    return r * (2.0 - x * r)


# ----------------------------------------------------------------------------
# Fused kernel:
#   grid axis 0 tiles sim (NQ, P) by rows; every step adds a per-lane partial
#   sum of squares into the resident (1, P) output.  The tiny box inputs are
#   resident (constant block index); the L1 + masked pairwise-GIoU math runs on
#   step 0 so it overlaps with the DMA of the remaining sim tiles.
# ----------------------------------------------------------------------------
def _fused_loss_kernel(nq, m_ref, sim_ref, src_ref, src_t_ref, tgt_t_ref,
                       part_ref, l1_ref, giou_ref):
    i = pl.program_id(0)
    tile_rows = sim_ref.shape[0]

    @pl.when(i == 0)
    def _init_and_box():
        part_ref[...] = jnp.zeros_like(part_ref)

        m = m_ref[0]                                 # matched-query count (SMEM scalar)
        mf = jnp.maximum(m, 1).astype(jnp.float32)   # guard m == 0
        has = (m > 0).astype(jnp.float32)
        mpad = src_ref.shape[0]

        col_valid = lax.broadcasted_iota(jnp.int32, (1, mpad), 1) < m      # (1, Mpad)
        row_valid = lax.broadcasted_iota(jnp.int32, (mpad, 1), 0) < m      # (Mpad, 1)
        col_mask = col_valid.astype(jnp.float32)

        # --- L1 on yolo-converted boxes, lane-dense (4, Mpad) layout ---
        s = src_t_ref[...].astype(jnp.float32)       # rows: x0, y0, x1, y1
        t = tgt_t_ref[...].astype(jnp.float32)
        d_cx = jnp.abs(0.5 * (s[0:1] + s[2:3]) - 0.5 * (t[0:1] + t[2:3]))
        d_cy = jnp.abs(0.5 * (s[1:2] + s[3:4]) - 0.5 * (t[1:2] + t[3:4]))
        d_w = jnp.abs((s[2:3] - s[0:1]) - (t[2:3] - t[0:1]))
        d_h = jnp.abs((s[3:4] - s[1:2]) - (t[3:4] - t[1:2]))
        l1_sum = jnp.sum((d_cx + d_cy + d_w + d_h) * col_mask, keepdims=True)
        l1_ref[...] = has * l1_sum / (mf * 4.0)

        # --- pairwise GIoU (Mpad, Mpad), masked to the first m rows/cols ---
        src = src_ref[...].astype(jnp.float32)       # (Mpad, 4)
        sx0, sy0 = src[:, 0:1], src[:, 1:2]
        sx1, sy1 = src[:, 2:3], src[:, 3:4]
        tx0, ty0, tx1, ty1 = t[0:1, :], t[1:2, :], t[2:3, :], t[3:4, :]

        area_s = (sx1 - sx0) * (sy1 - sy0)           # (Mpad, 1)
        area_t = (tx1 - tx0) * (ty1 - ty0)           # (1, Mpad)
        ix0 = jnp.maximum(sx0, tx0)
        iy0 = jnp.maximum(sy0, ty0)
        ix1 = jnp.minimum(sx1, tx1)
        iy1 = jnp.minimum(sy1, ty1)
        inter = jnp.maximum(ix1 - ix0, 0.0) * jnp.maximum(iy1 - iy0, 0.0)   # (Mpad, Mpad)
        union = area_s + area_t - inter
        iou = inter * _recip(union + _EPS)

        cx0 = jnp.minimum(sx0, tx0)
        cy0 = jnp.minimum(sy0, ty0)
        cx1 = jnp.maximum(sx1, tx1)
        cy1 = jnp.maximum(sy1, ty1)
        area_c = jnp.maximum(cx1 - cx0, 0.0) * jnp.maximum(cy1 - cy0, 0.0)
        giou = iou - (area_c - union) * _recip(area_c + _EPS)

        pair_mask = (row_valid & col_valid).astype(jnp.float32)
        giou_sum = jnp.sum((1.0 - giou) * pair_mask, keepdims=True)
        giou_ref[...] = has * giou_sum / (mf * mf)

    # --- streaming sum of squares: per-lane partials only (cross-lane reduce deferred) ---
    x = sim_ref[...].astype(jnp.float32)             # (tile_rows, P); bf16 upcast in-register
    if nq % tile_rows != 0:                          # static: only when a tail tile exists
        rix = lax.broadcasted_iota(jnp.int32, x.shape, 0) + i * tile_rows
        x = jnp.where(rix < nq, x, 0.0)              # zero OOB garbage rows of the last tile
    part_ref[...] += jnp.sum(x * x, axis=0, keepdims=True)   # (1, P)


def _fused_losses_call(m_arr, sim2d, src_m, src_t, tgt_t):
    nq, p = sim2d.shape
    mpad = src_m.shape[0]
    itemsize = sim2d.dtype.itemsize

    rows_for_bytes = max(8, (_TARGET_BLOCK_BYTES // max(p * itemsize, 1)) // 8 * 8)
    tile_rows = int(min(_MAX_TILE_ROWS, rows_for_bytes))
    if nq <= tile_rows:
        tile_rows = nq                               # single full-extent block
    grid = (pl.cdiv(nq, tile_rows),)

    # VMEM budget: double-buffered (lane-padded) sim blocks + pairwise GIoU temporaries.
    sim_vmem = 2 * tile_rows * 128 * 4
    giou_vmem = 10 * mpad * mpad * 4
    vmem_limit = int(min(48 << 20, max(32 << 20, sim_vmem + giou_vmem + (2 << 20))))

    kernel = functools.partial(_fused_loss_kernel, nq)

    part, l1, giou = pl.pallas_call(
        kernel,
        out_shape=(jax.ShapeDtypeStruct((1, p), jnp.float32),
                   jax.ShapeDtypeStruct((1, 1), jnp.float32),
                   jax.ShapeDtypeStruct((1, 1), jnp.float32)),
        grid_spec=pltpu.PrefetchScalarGridSpec(
            num_scalar_prefetch=1,
            grid=grid,
            in_specs=[
                pl.BlockSpec((tile_rows, p), lambda i, m: (i, 0)),
                pl.BlockSpec((mpad, 4), lambda i, m: (0, 0)),
                pl.BlockSpec((4, mpad), lambda i, m: (0, 0)),
                pl.BlockSpec((4, mpad), lambda i, m: (0, 0)),
            ],
            out_specs=(
                pl.BlockSpec((1, p), lambda i, m: (0, 0)),
                pl.BlockSpec((1, 1), lambda i, m: (0, 0)),
                pl.BlockSpec((1, 1), lambda i, m: (0, 0)),
            ),
        ),
        compiler_params=pltpu.CompilerParams(
            dimension_semantics=("arbitrary",),
            vmem_limit_bytes=vmem_limit,
        ),
    )(m_arr, sim2d, src_m, src_t, tgt_t)
    return jnp.sum(part), l1[0, 0], giou[0, 0]


# ----------------------------------------------------------------------------
# Jitted end-to-end loss: device-side static-shape gathers + one fused kernel.
# ----------------------------------------------------------------------------
def _make_loss_fn(eos_coef, loss_names, loss_weights):

    @functools.partial(jax.jit, static_argnames=("max_m",))
    def loss_fn(sim, src_boxes, flags, gt_idx, tgt_boxes, tgt_ids, *, max_m):
        B, G, Nb, P = sim.shape
        N = G * Nb
        NQ = B * N

        flags_flat = flags.reshape(NQ)
        gt_flat = gt_idx.reshape(NQ).astype(jnp.int32)
        src_flat = src_boxes.reshape(NQ, 4).astype(jnp.float32)
        sim2d = sim.reshape(NQ, P)                   # leading-dim collapse only: no relayout copy

        mask = flags_flat > 0
        m_count = jnp.sum(mask.astype(jnp.int32))

        q_idx = jnp.nonzero(mask, size=max_m, fill_value=0)[0].astype(jnp.int32)
        valid = jnp.arange(max_m, dtype=jnp.int32) < m_count

        b_idx = q_idx // N
        sel = gt_flat[q_idx]
        src_m = src_flat[q_idx]                                  # (max_m, 4)
        tgt_m = tgt_boxes[b_idx, sel].astype(jnp.float32)        # (max_m, 4)
        tid = tgt_ids[b_idx, sel].astype(jnp.int32)              # (max_m,)

        # padded rows -> safe unit boxes so pairwise math stays finite (masked out in-kernel)
        dummy = jnp.array([0.0, 0.0, 1.0, 1.0], jnp.float32)
        v4 = valid[:, None]
        src_m = jnp.where(v4, src_m, dummy)
        tgt_m = jnp.where(v4, tgt_m, dummy)

        # --- alignment matched-row correction (O(max_m * P), tiny now) ---
        #   sum_p (sim - onehot)^2 = ||sim||^2                 (unmatched rows)
        #                          = ||sim||^2 - 2*sim[id] + 1 (matched rows)
        sim_m = sim2d[q_idx].astype(jnp.float32)                 # (max_m, P)
        sim_at_id = jnp.take_along_axis(sim_m, tid[:, None], axis=-1)[:, 0]
        corr = jnp.where(
            valid,
            (1.0 - eos_coef) * jnp.sum(sim_m * sim_m, axis=-1) + 1.0 - 2.0 * sim_at_id,
            0.0)
        corr_sum = jnp.sum(corr)

        m_arr = m_count.reshape(1)
        sumsq, l1, giou = _fused_losses_call(
            m_arr, sim2d, src_m, jnp.transpose(src_m), jnp.transpose(tgt_m))

        align = (eos_coef * sumsq + corr_sum) / float(NQ)

        computed = {'bbox_l1': l1, 'bbox_giou': giou, 'align_loss': align}
        out = {}
        total_loss = 0.0
        for i, name in enumerate(loss_names):
            out[name] = computed[name]
            out[f'scaled_{name}'] = computed[name] * loss_weights[i]
            total_loss = total_loss + out[f'scaled_{name}']
        out['loss'] = total_loss
        return out

    return loss_fn


# ----------------------------------------------------------------------------
# LossCriterion wrapper
# ----------------------------------------------------------------------------
class LossCriterionPallas:
    def __init__(self, eval_config, num_classes=None):
        self.num_classes = num_classes
        self.loss_names = tuple(eval_config['losses']['names'])
        self.loss_weights = tuple(float(w) for w in eval_config['losses']['weights'])
        self.eos_coef = float(eval_config['losses'].get('eos_coef', 0.1))
        self._loss_fn = _make_loss_fn(self.eos_coef, self.loss_names, self.loss_weights)

    def __call__(self, similarity_scores, model_bboxes, match_bbox_flags,
                 match_gt_bbox_indexes, target_bboxes, target_bbox_ids):
        # host-side: only the tiny ragged->padded stacking of per-image GT lists
        B = len(target_bboxes)
        t_max = max(1, max(int(np.asarray(t).shape[0]) for t in target_bboxes))
        tgt_boxes = np.zeros((B, t_max, 4), np.float32)
        tgt_ids = np.zeros((B, t_max), np.int32)
        for b in range(B):
            tb = np.asarray(target_bboxes[b], np.float32).reshape(-1, 4)
            ti = np.asarray(target_bbox_ids[b], np.int64).reshape(-1)
            tgt_boxes[b, :tb.shape[0]] = tb
            tgt_ids[b, :ti.shape[0]] = ti

        # exact host-side match count (tiny array) -> tight, bucketed static pad size
        flags_np = np.asarray(match_bbox_flags)
        max_m = _bucket_matches(int((flags_np > 0).sum()))

        return self._loss_fn(
            jnp.asarray(similarity_scores),          # dtype preserved; feed bf16 to halve HBM traffic
            jnp.asarray(model_bboxes, jnp.float32),
            jnp.asarray(flags_np.astype(np.int32)),
            jnp.asarray(match_gt_bbox_indexes, jnp.int32),
            jnp.asarray(tgt_boxes),
            jnp.asarray(tgt_ids),
            max_m=max_m,
        )


# ----------------------------------------------------------------------------
# numpy reference (original, un-decomposed semantics) for verification
# ----------------------------------------------------------------------------
def _numpy_reference(sim_flat, tgt_onehot, weights, src_m, tgt_m):
    diff = sim_flat - tgt_onehot
    align = ((diff ** 2).sum(-1) * weights).mean()

    def to_yolo(b):
        return np.stack([(b[:, 0] + b[:, 2]) * 0.5, (b[:, 1] + b[:, 3]) * 0.5,
                         b[:, 2] - b[:, 0], b[:, 3] - b[:, 1]], axis=-1)

    l1 = np.abs(to_yolo(src_m) - to_yolo(tgt_m)).mean()

    area_s = (src_m[:, 2] - src_m[:, 0]) * (src_m[:, 3] - src_m[:, 1])
    area_t = (tgt_m[:, 2] - tgt_m[:, 0]) * (tgt_m[:, 3] - tgt_m[:, 1])
    lt = np.maximum(src_m[:, None, :2], tgt_m[None, :, :2])
    rb = np.minimum(src_m[:, None, 2:], tgt_m[None, :, 2:])
    wh = np.clip(rb - lt, 0, None)
    inter = wh[..., 0] * wh[..., 1]
    union = area_s[:, None] + area_t[None, :] - inter
    iou = inter / (union + _EPS)
    ltc = np.minimum(src_m[:, None, :2], tgt_m[None, :, :2])
    rbc = np.maximum(src_m[:, None, 2:], tgt_m[None, :, 2:])
    whc = np.clip(rbc - ltc, 0, None)
    area_c = whc[..., 0] * whc[..., 1]
    giou = iou - (area_c - union) / (area_c + _EPS)
    return l1, (1.0 - giou).mean(), align


if __name__ == "__main__":
    B, G, Nb, P = 2, 2, 8, 8          # batch, n_groups, n_bboxes, n_phrases
    N_GT = 3                          # gt boxes per image

    key = jax.random.PRNGKey(0)
    k_sim, k_src, k_g0, k_g1, k_idx = jax.random.split(key, 5)

    def rand_boxes(k, shape):
        pts = jax.random.uniform(k, shape + (2, 2), jnp.float32)
        lo = jnp.min(pts, axis=-2)
        hi = jnp.max(pts, axis=-2)
        return jnp.concatenate([lo, hi], axis=-1)   # normalized xyxy

    similarity_scores = jax.random.uniform(k_sim, (B, G, Nb, P), jnp.float32)
    model_bboxes = rand_boxes(k_src, (B, G, Nb))
    target_bboxes = [np.asarray(rand_boxes(k_g0, (N_GT,))),
                     np.asarray(rand_boxes(k_g1, (N_GT,)))]
    target_bbox_ids = [np.array([0, 3, 5], np.int64), np.array([1, 2, 7], np.int64)]

    match_gt_bbox_indexes = np.asarray(
        jax.random.randint(k_idx, (B, G, Nb), 0, N_GT), np.int32)
    match_bbox_flags = np.zeros((B, G, Nb), np.int32)
    match_bbox_flags[0, 0, 1] = 1
    match_bbox_flags[0, 1, 3] = 1
    match_bbox_flags[1, 0, 0] = 1
    match_bbox_flags[1, 0, 7] = 1
    match_bbox_flags[1, 1, 5] = 1

    eval_config = {'losses': {'names': ['bbox_l1', 'bbox_giou', 'align_loss'],
                              'weights': [5.0, 2.0, 1.0],
                              'eos_coef': 0.1}}
    criterion = LossCriterionPallas(eval_config)

    losses = criterion(similarity_scores, model_bboxes, match_bbox_flags,
                       match_gt_bbox_indexes, target_bboxes, target_bbox_ids)
    total = jax.block_until_ready(losses['loss'])

    # verify against numpy reference (original dense one-hot semantics)
    sim_flat = np.asarray(similarity_scores).reshape(B, G * Nb, P)
    flags = match_bbox_flags.reshape(B, -1)
    gt_idx = match_gt_bbox_indexes.reshape(B, -1)
    src_all = np.asarray(model_bboxes).reshape(B, -1, 4)
    onehot = np.zeros((B, G * Nb, P), np.float32)
    w = np.full((B, G * Nb), 0.1, np.float32)
    s_list, t_list = [], []
    for b in range(B):
        m = flags[b] > 0
        sel = gt_idx[b][m]
        s_list.append(src_all[b][m])
        t_list.append(target_bboxes[b][sel])
        onehot[b, m, :] = np.eye(P, dtype=np.float32)[target_bbox_ids[b][sel]]
        w[b, m] = 1.0
    ref_l1, ref_giou, ref_align = _numpy_reference(
        sim_flat, onehot, w, np.concatenate(s_list), np.concatenate(t_list))

    # bbox_l1 / align use exact arithmetic -> tight tolerances; bbox_giou uses the
    # approx-reciprocal (+1 Newton step) path -> slightly looser tolerance.
    np.testing.assert_allclose(float(losses['bbox_l1']), ref_l1, rtol=2e-5, atol=2e-5)
    np.testing.assert_allclose(float(losses['align_loss']), ref_align, rtol=2e-5, atol=2e-5)
    np.testing.assert_allclose(float(losses['bbox_giou']), ref_giou, rtol=1e-3, atol=1e-3)
    np.testing.assert_allclose(
        float(total), 5.0 * ref_l1 + 2.0 * ref_giou + 1.0 * ref_align, rtol=1e-3, atol=1e-3)

    print("KERNEL_OK")
</pallas_src>

<mosaic_0001>
module attributes {stable_mosaic.version = 11 : i64} {
  func.func private @main(%arg0: i32) attributes {dimension_semantics = [#tpu.dimension_semantics<core_parallel>], iteration_bounds = array<i64: 2>, tpu.core_type = #tpu.core_type<sc_scalar_subcore>, window_params = []} {
    return
  }
}

module attributes {stable_mosaic.version = 11 : i64} {
  func.func private @main(%arg0: i32) attributes {dimension_semantics = [#tpu.dimension_semantics<core_parallel>], iteration_bounds = array<i64: 2>, tpu.core_type = #tpu.core_type<sc_scalar_subcore>, window_params = []} {
    return
  }
}

module attributes {stable_mosaic.version = 11 : i64} {
  func.func @_fused_loss_kernel(%arg0: i32, %arg1: memref<1xi32, #tpu.memory_space<smem>>, %arg2: memref<32x8xf32, #tpu.memory_space<vmem>>, %arg3: memref<8x4xf32, #tpu.memory_space<vmem>>, %arg4: memref<4x8xf32, #tpu.memory_space<vmem>>, %arg5: memref<4x8xf32, #tpu.memory_space<vmem>>, %arg6: memref<1x8xf32, #tpu.memory_space<vmem>>, %arg7: memref<1x1xf32, #tpu.memory_space<vmem>>, %arg8: memref<1x1xf32, #tpu.memory_space<vmem>>) attributes {dimension_semantics = [#tpu.dimension_semantics<arbitrary>], iteration_bounds = array<i64: 1>, scalar_prefetch = 1 : i64, scratch_operands = 0 : i64, tpu.core_type = #tpu.core_type<tc>, window_params = [{transform_indices = @transform_0, window_bounds = array<i64: 32, 8>}, {pipeline_mode = #tpu.pipeline_mode<synchronous>, transform_indices = @transform_1, window_bounds = array<i64: 8, 4>}, {pipeline_mode = #tpu.pipeline_mode<synchronous>, transform_indices = @transform_2, window_bounds = array<i64: 4, 8>}, {pipeline_mode = #tpu.pipeline_mode<synchronous>, transform_indices = @transform_3, window_bounds = array<i64: 4, 8>}, {pipeline_mode = #tpu.pipeline_mode<synchronous>, transform_indices = @transform_4, window_bounds = array<i64: 1, 8>}, {pipeline_mode = #tpu.pipeline_mode<synchronous>, transform_indices = @transform_5, window_bounds = array<i64: 1, 1>}, {pipeline_mode = #tpu.pipeline_mode<synchronous>, transform_indices = @transform_6, window_bounds = array<i64: 1, 1>}]} {
    %c0_i32 = arith.constant 0 : i32
    %0 = arith.cmpi eq, %arg0, %c0_i32 : i32
    %1 = arith.extui %0 : i1 to i32
    %c0_i32_0 = arith.constant 0 : i32
    %2 = arith.cmpi ne, %1, %c0_i32_0 : i32
    scf.if %2 {
      %cst_6 = arith.constant 0.000000e+00 : f32
      %10 = vector.broadcast %cst_6 : f32 to vector<1x8xf32>
      %c0_7 = arith.constant 0 : index
      %c0_8 = arith.constant 0 : index
      %11 = vector.load %arg6[%c0_7, %c0_8] : memref<1x8xf32, #tpu.memory_space<vmem>>, vector<1x8xf32>
      tpu.vector_store %arg6[%c0_7, %c0_8], %10 {strides = array<i32>} : memref<1x8xf32, #tpu.memory_space<vmem>>, vector<1x8xf32>,
      %c0_9 = arith.constant 0 : index
      %12 = memref.load %arg1[%c0_9] : memref<1xi32, #tpu.memory_space<smem>>
      %c1_i32 = arith.constant 1 : i32
      %13 = arith.maxsi %12, %c1_i32 : i32
      %14 = arith.sitofp %13 : i32 to f32
      %c0_i32_10 = arith.constant 0 : i32
      %15 = arith.cmpi sgt, %12, %c0_i32_10 : i32
      %16 = arith.extui %15 : i1 to i32
      %17 = arith.sitofp %16 : i32 to f32
      %18 = tpu.iota {dimensions = array<i32: 1>} : vector<1x8xi32>
      %19 = vector.broadcast %12 : i32 to vector<1x8xi32>
      %20 = arith.cmpi slt, %18, %19 : vector<1x8xi32>
      %21 = tpu.iota {dimensions = array<i32: 0>} : vector<8x1xi32>
      %22 = vector.broadcast %12 : i32 to vector<8x1xi32>
      %23 = arith.cmpi slt, %21, %22 : vector<8x1xi32>
      %24 = arith.extui %20 : vector<1x8xi1> to vector<1x8xi32>
      %25 = arith.sitofp %24 : vector<1x8xi32> to vector<1x8xf32>
      %c0_11 = arith.constant 0 : index
      %c0_12 = arith.constant 0 : index
      %26 = vector.load %arg4[%c0_11, %c0_12] : memref<4x8xf32, #tpu.memory_space<vmem>>, vector<4x8xf32>
      %c0_13 = arith.constant 0 : index
      %c0_14 = arith.constant 0 : index
      %27 = vector.load %arg5[%c0_13, %c0_14] : memref<4x8xf32, #tpu.memory_space<vmem>>, vector<4x8xf32>
      %28 = vector.extract_strided_slice %26 {offsets = [0, 0], sizes = [1, 8], strides = [1, 1]} : vector<4x8xf32> to vector<1x8xf32>
      %29 = vector.extract_strided_slice %26 {offsets = [2, 0], sizes = [1, 8], strides = [1, 1]} : vector<4x8xf32> to vector<1x8xf32>
      %30 = arith.addf %28, %29 : vector<1x8xf32>
      %cst_15 = arith.constant 5.000000e-01 : f32
      %31 = vector.broadcast %cst_15 : f32 to vector<1x8xf32>
      %32 = arith.mulf %31, %30 : vector<1x8xf32>
      %33 = vector.extract_strided_slice %27 {offsets = [0, 0], sizes = [1, 8], strides = [1, 1]} : vector<4x8xf32> to vector<1x8xf32>
      %34 = vector.extract_strided_slice %27 {offsets = [2, 0], sizes = [1, 8], strides = [1, 1]} : vector<4x8xf32> to vector<1x8xf32>
      %35 = arith.addf %33, %34 : vector<1x8xf32>
      %cst_16 = arith.constant 5.000000e-01 : f32
      %36 = vector.broadcast %cst_16 : f32 to vector<1x8xf32>
      %37 = arith.mulf %36, %35 : vector<1x8xf32>
      %38 = arith.subf %32, %37 : vector<1x8xf32>
      %39 = math.absf %38 : vector<1x8xf32>
      %40 = vector.extract_strided_slice %26 {offsets = [1, 0], sizes = [1, 8], strides = [1, 1]} : vector<4x8xf32> to vector<1x8xf32>
      %41 = vector.extract_strided_slice %26 {offsets = [3, 0], sizes = [1, 8], strides = [1, 1]} : vector<4x8xf32> to vector<1x8xf32>
      %42 = arith.addf %40, %41 : vector<1x8xf32>
      %cst_17 = arith.constant 5.000000e-01 : f32
      %43 = vector.broadcast %cst_17 : f32 to vector<1x8xf32>
      %44 = arith.mulf %43, %42 : vector<1x8xf32>
      %45 = vector.extract_strided_slice %27 {offsets = [1, 0], sizes = [1, 8], strides = [1, 1]} : vector<4x8xf32> to vector<1x8xf32>
      %46 = vector.extract_strided_slice %27 {offsets = [3, 0], sizes = [1, 8], strides = [1, 1]} : vector<4x8xf32> to vector<1x8xf32>
      %47 = arith.addf %45, %46 : vector<1x8xf32>
      %cst_18 = arith.constant 5.000000e-01 : f32
      %48 = vector.broadcast %cst_18 : f32 to vector<1x8xf32>
      %49 = arith.mulf %48, %47 : vector<1x8xf32>
      %50 = arith.subf %44, %49 : vector<1x8xf32>
      %51 = math.absf %50 : vector<1x8xf32>
      %52 = vector.extract_strided_slice %26 {offsets = [2, 0], sizes = [1, 8], strides = [1, 1]} : vector<4x8xf32> to vector<1x8xf32>
      %53 = vector.extract_strided_slice %26 {offsets = [0, 0], sizes = [1, 8], strides = [1, 1]} : vector<4x8xf32> to vector<1x8xf32>
      %54 = arith.subf %52, %53 : vector<1x8xf32>
      %55 = vector.extract_strided_slice %27 {offsets = [2, 0], sizes = [1, 8], strides = [1, 1]} : vector<4x8xf32> to vector<1x8xf32>
      %56 = vector.extract_strided_slice %27 {offsets = [0, 0], sizes = [1, 8], strides = [1, 1]} : vector<4x8xf32> to vector<1x8xf32>
      %57 = arith.subf %55, %56 : vector<1x8xf32>
      %58 = arith.subf %54, %57 : vector<1x8xf32>
      %59 = math.absf %58 : vector<1x8xf32>
      %60 = vector.extract_strided_slice %26 {offsets = [3, 0], sizes = [1, 8], strides = [1, 1]} : vector<4x8xf32> to vector<1x8xf32>
      %61 = vector.extract_strided_slice %26 {offsets = [1, 0], sizes = [1, 8], strides = [1, 1]} : vector<4x8xf32> to vector<1x8xf32>
      %62 = arith.subf %60, %61 : vector<1x8xf32>
      %63 = vector.extract_strided_slice %27 {offsets = [3, 0], sizes = [1, 8], strides = [1, 1]} : vector<4x8xf32> to vector<1x8xf32>
      %64 = vector.extract_strided_slice %27 {offsets = [1, 0], sizes = [1, 8], strides = [1, 1]} : vector<4x8xf32> to vector<1x8xf32>
      %65 = arith.subf %63, %64 : vector<1x8xf32>
      %66 = arith.subf %62, %65 : vector<1x8xf32>
      %67 = math.absf %66 : vector<1x8xf32>
      %68 = arith.addf %39, %51 : vector<1x8xf32>
      %69 = arith.addf %68, %59 : vector<1x8xf32>
      %70 = arith.addf %69, %67 : vector<1x8xf32>
      %71 = arith.mulf %70, %25 : vector<1x8xf32>
      %72 = vector.shape_cast %71 : vector<1x8xf32> to vector<1x1x8xf32>
      %cst_19 = arith.constant dense<0.000000e+00> : vector<1xf32>
      %73 = vector.multi_reduction <add>, %72, %cst_19 [1, 2] : vector<1x1x8xf32> to vector<1xf32>
      %74 = vector.shape_cast %73 : vector<1xf32> to vector<1x1x1xf32>
      %75 = vector.extract %74[0, 0, 0] : f32 from vector<1x1x1xf32>
      %76 = vector.broadcast %75 : f32 to vector<1x1xf32>
      %77 = vector.broadcast %17 : f32 to vector<1x1xf32>
      %78 = arith.mulf %77, %76 : vector<1x1xf32>
      %cst_20 = arith.constant 4.000000e+00 : f32
      %79 = arith.mulf %14, %cst_20 : f32
      %80 = vector.broadcast %79 : f32 to vector<1x1xf32>
      %81 = arith.divf %78, %80 : vector<1x1xf32>
      %c0_21 = arith.constant 0 : index
      %c0_22 = arith.constant 0 : index
      %82 = vector.load %arg7[%c0_21, %c0_22] : memref<1x1xf32, #tpu.memory_space<vmem>>, vector<1x1xf32>
      tpu.vector_store %arg7[%c0_21, %c0_22], %81 {strides = array<i32>} : memref<1x1xf32, #tpu.memory_space<vmem>>, vector<1x1xf32>,
      %c0_23 = arith.constant 0 : index
      %c0_24 = arith.constant 0 : index
      %83 = vector.load %arg3[%c0_23, %c0_24] : memref<8x4xf32, #tpu.memory_space<vmem>>, vector<8x4xf32>
      %84 = vector.extract_strided_slice %83 {offsets = [0, 0], sizes = [8, 1], strides = [1, 1]} : vector<8x4xf32> to vector<8x1xf32>
      %85 = vector.extract_strided_slice %83 {offsets = [0, 1], sizes = [8, 1], strides = [1, 1]} : vector<8x4xf32> to vector<8x1xf32>
      %86 = vector.extract_strided_slice %83 {offsets = [0, 2], sizes = [8, 1], strides = [1, 1]} : vector<8x4xf32> to vector<8x1xf32>
      %87 = vector.extract_strided_slice %83 {offsets = [0, 3], sizes = [8, 1], strides = [1, 1]} : vector<8x4xf32> to vector<8x1xf32>
      %88 = vector.extract_strided_slice %27 {offsets = [0, 0], sizes = [1, 8], strides = [1, 1]} : vector<4x8xf32> to vector<1x8xf32>
      %89 = vector.extract_strided_slice %27 {offsets = [1, 0], sizes = [1, 8], strides = [1, 1]} : vector<4x8xf32> to vector<1x8xf32>
      %90 = vector.extract_strided_slice %27 {offsets = [2, 0], sizes = [1, 8], strides = [1, 1]} : vector<4x8xf32> to vector<1x8xf32>
      %91 = vector.extract_strided_slice %27 {offsets = [3, 0], sizes = [1, 8], strides = [1, 1]} : vector<4x8xf32> to vector<1x8xf32>
      %92 = arith.subf %86, %84 : vector<8x1xf32>
      %93 = arith.subf %87, %85 : vector<8x1xf32>
      %94 = arith.mulf %92, %93 : vector<8x1xf32>
      %95 = arith.subf %90, %88 : vector<1x8xf32>
      %96 = arith.subf %91, %89 : vector<1x8xf32>
      %97 = arith.mulf %95, %96 : vector<1x8xf32>
      %98 = vector.broadcast %84 : vector<8x1xf32> to vector<8x8xf32>
      %99 = vector.broadcast %88 : vector<1x8xf32> to vector<8x8xf32>
      %100 = arith.maximumf %98, %99 : vector<8x8xf32>
      %101 = vector.broadcast %85 : vector<8x1xf32> to vector<8x8xf32>
      %102 = vector.broadcast %89 : vector<1x8xf32> to vector<8x8xf32>
      %103 = arith.maximumf %101, %102 : vector<8x8xf32>
      %104 = vector.broadcast %86 : vector<8x1xf32> to vector<8x8xf32>
      %105 = vector.broadcast %90 : vector<1x8xf32> to vector<8x8xf32>
      %106 = arith.minimumf %104, %105 : vector<8x8xf32>
      %107 = vector.broadcast %87 : vector<8x1xf32> to vector<8x8xf32>
      %108 = vector.broadcast %91 : vector<1x8xf32> to vector<8x8xf32>
      %109 = arith.minimumf %107, %108 : vector<8x8xf32>
      %110 = arith.subf %106, %100 : vector<8x8xf32>
      %cst_25 = arith.constant 0.000000e+00 : f32
      %111 = vector.broadcast %cst_25 : f32 to vector<8x8xf32>
      %112 = arith.maximumf %110, %111 : vector<8x8xf32>
      %113 = arith.subf %109, %103 : vector<8x8xf32>
      %cst_26 = arith.constant 0.000000e+00 : f32
      %114 = vector.broadcast %cst_26 : f32 to vector<8x8xf32>
      %115 = arith.maximumf %113, %114 : vector<8x8xf32>
      %116 = arith.mulf %112, %115 : vector<8x8xf32>
      %117 = vector.broadcast %94 : vector<8x1xf32> to vector<8x8xf32>
      %118 = vector.broadcast %97 : vector<1x8xf32> to vector<8x8xf32>
      %119 = arith.addf %117, %118 : vector<8x8xf32>
      %120 = arith.subf %119, %116 : vector<8x8xf32>
      %cst_27 = arith.constant 9.99999993E-9 : f32
      %121 = vector.broadcast %cst_27 : f32 to vector<8x8xf32>
      %122 = arith.addf %120, %121 : vector<8x8xf32>
      %123 = tpu.reciprocal %122 {approx = true} : vector<8x8xf32> -> vector<8x8xf32>
      %124 = arith.mulf %122, %123 : vector<8x8xf32>
      %cst_28 = arith.constant 2.000000e+00 : f32
      %125 = vector.broadcast %cst_28 : f32 to vector<8x8xf32>
      %126 = arith.subf %125, %124 : vector<8x8xf32>
      %127 = arith.mulf %123, %126 : vector<8x8xf32>
      %128 = arith.mulf %116, %127 : vector<8x8xf32>
      %129 = vector.broadcast %84 : vector<8x1xf32> to vector<8x8xf32>
      %130 = vector.broadcast %88 : vector<1x8xf32> to vector<8x8xf32>
      %131 = arith.minimumf %129, %130 : vector<8x8xf32>
      %132 = vector.broadcast %85 : vector<8x1xf32> to vector<8x8xf32>
      %133 = vector.broadcast %89 : vector<1x8xf32> to vector<8x8xf32>
      %134 = arith.minimumf %132, %133 : vector<8x8xf32>
      %135 = vector.broadcast %86 : vector<8x1xf32> to vector<8x8xf32>
      %136 = vector.broadcast %90 : vector<1x8xf32> to vector<8x8xf32>
      %137 = arith.maximumf %135, %136 : vector<8x8xf32>
      %138 = vector.broadcast %87 : vector<8x1xf32> to vector<8x8xf32>
      %139 = vector.broadcast %91 : vector<1x8xf32> to vector<8x8xf32>
      %140 = arith.maximumf %138, %139 : vector<8x8xf32>
      %141 = arith.subf %137, %131 : vector<8x8xf32>
      %cst_29 = arith.constant 0.000000e+00 : f32
      %142 = vector.broadcast %cst_29 : f32 to vector<8x8xf32>
      %143 = arith.maximumf %141, %142 : vector<8x8xf32>
      %144 = arith.subf %140, %134 : vector<8x8xf32>
      %cst_30 = arith.constant 0.000000e+00 : f32
      %145 = vector.broadcast %cst_30 : f32 to vector<8x8xf32>
      %146 = arith.maximumf %144, %145 : vector<8x8xf32>
      %147 = arith.mulf %143, %146 : vector<8x8xf32>
      %148 = arith.subf %147, %120 : vector<8x8xf32>
      %cst_31 = arith.constant 9.99999993E-9 : f32
      %149 = vector.broadcast %cst_31 : f32 to vector<8x8xf32>
      %150 = arith.addf %147, %149 : vector<8x8xf32>
      %151 = tpu.reciprocal %150 {approx = true} : vector<8x8xf32> -> vector<8x8xf32>
      %152 = arith.mulf %150, %151 : vector<8x8xf32>
      %cst_32 = arith.constant 2.000000e+00 : f32
      %153 = vector.broadcast %cst_32 : f32 to vector<8x8xf32>
      %154 = arith.subf %153, %152 : vector<8x8xf32>
      %155 = arith.mulf %151, %154 : vector<8x8xf32>
      %156 = arith.mulf %148, %155 : vector<8x8xf32>
      %157 = arith.subf %128, %156 : vector<8x8xf32>
      %158 = vector.broadcast %23 : vector<8x1xi1> to vector<8x8xi1>
      %159 = vector.broadcast %20 : vector<1x8xi1> to vector<8x8xi1>
      %160 = arith.andi %158, %159 : vector<8x8xi1>
      %161 = arith.extui %160 : vector<8x8xi1> to vector<8x8xi32>
      %162 = arith.sitofp %161 : vector<8x8xi32> to vector<8x8xf32>
      %cst_33 = arith.constant 1.000000e+00 : f32
      %163 = vector.broadcast %cst_33 : f32 to vector<8x8xf32>
      %164 = arith.subf %163, %157 : vector<8x8xf32>
      %165 = arith.mulf %164, %162 : vector<8x8xf32>
      %166 = vector.shape_cast %165 : vector<8x8xf32> to vector<1x8x8xf32>
      %cst_34 = arith.constant dense<0.000000e+00> : vector<1xf32>
      %167 = vector.multi_reduction <add>, %166, %cst_34 [1, 2] : vector<1x8x8xf32> to vector<1xf32>
      %168 = vector.shape_cast %167 : vector<1xf32> to vector<1x1x1xf32>
      %169 = vector.extract %168[0, 0, 0] : f32 from vector<1x1x1xf32>
      %170 = vector.broadcast %169 : f32 to vector<1x1xf32>
      %171 = vector.broadcast %17 : f32 to vector<1x1xf32>
      %172 = arith.mulf %171, %170 : vector<1x1xf32>
      %173 = arith.mulf %14, %14 : f32
      %174 = vector.broadcast %173 : f32 to vector<1x1xf32>
      %175 = arith.divf %172, %174 : vector<1x1xf32>
      %c0_35 = arith.constant 0 : index
      %c0_36 = arith.constant 0 : index
      %176 = vector.load %arg8[%c0_35, %c0_36] : memref<1x1xf32, #tpu.memory_space<vmem>>, vector<1x1xf32>
      tpu.vector_store %arg8[%c0_35, %c0_36], %175 {strides = array<i32>} : memref<1x1xf32, #tpu.memory_space<vmem>>, vector<1x1xf32>,
    } else {
    }
    %c0 = arith.constant 0 : index
    %c0_1 = arith.constant 0 : index
    %3 = vector.load %arg2[%c0, %c0_1] : memref<32x8xf32, #tpu.memory_space<vmem>>, vector<32x8xf32>
    %c0_2 = arith.constant 0 : index
    %c0_3 = arith.constant 0 : index
    %4 = vector.load %arg6[%c0_2, %c0_3] : memref<1x8xf32, #tpu.memory_space<vmem>>, vector<1x8xf32>
    %5 = arith.mulf %3, %3 : vector<32x8xf32>
    %cst = arith.constant dense<0.000000e+00> : vector<8xf32>
    %6 = vector.multi_reduction <add>, %5, %cst [0] : vector<32x8xf32> to vector<8xf32>
    %7 = vector.shape_cast %6 : vector<8xf32> to vector<1x8xf32>
    %8 = arith.addf %4, %7 : vector<1x8xf32>
    %c0_4 = arith.constant 0 : index
    %c0_5 = arith.constant 0 : index
    %9 = vector.load %arg6[%c0_4, %c0_5] : memref<1x8xf32, #tpu.memory_space<vmem>>, vector<1x8xf32>
    tpu.vector_store %arg6[%c0_4, %c0_5], %8 {strides = array<i32>} : memref<1x8xf32, #tpu.memory_space<vmem>>, vector<1x8xf32>,
    return
  }
  func.func @transform_0(%arg0: i32, %arg1: memref<1xi32, #tpu.memory_space<smem>>) -> (i32, i32) {
    %c0_i32 = arith.constant 0 : i32
    %c0_i32_0 = arith.constant 0 : i32
    return %arg0, %c0_i32 : i32, i32
  }
  func.func @transform_1(%arg0: i32, %arg1: memref<1xi32, #tpu.memory_space<smem>>) -> (i32, i32) {
    %c0_i32 = arith.constant 0 : i32
    %c0_i32_0 = arith.constant 0 : i32
    %c0_i32_1 = arith.constant 0 : i32
    return %c0_i32, %c0_i32_0 : i32, i32
  }
  func.func @transform_2(%arg0: i32, %arg1: memref<1xi32, #tpu.memory_space<smem>>) -> (i32, i32) {
    %c0_i32 = arith.constant 0 : i32
    %c0_i32_0 = arith.constant 0 : i32
    %c0_i32_1 = arith.constant 0 : i32
    return %c0_i32, %c0_i32_0 : i32, i32
  }
  func.func @transform_3(%arg0: i32, %arg1: memref<1xi32, #tpu.memory_space<smem>>) -> (i32, i32) {
    %c0_i32 = arith.constant 0 : i32
    %c0_i32_0 = arith.constant 0 : i32
    %c0_i32_1 = arith.constant 0 : i32
    return %c0_i32, %c0_i32_0 : i32, i32
  }
  func.func @transform_4(%arg0: i32, %arg1: memref<1xi32, #tpu.memory_space<smem>>) -> (i32, i32) {
    %c0_i32 = arith.constant 0 : i32
    %c0_i32_0 = arith.constant 0 : i32
    %c0_i32_1 = arith.constant 0 : i32
    return %c0_i32, %c0_i32_0 : i32, i32
  }
  func.func @transform_5(%arg0: i32, %arg1: memref<1xi32, #tpu.memory_space<smem>>) -> (i32, i32) {
    %c0_i32 = arith.constant 0 : i32
    %c0_i32_0 = arith.constant 0 : i32
    %c0_i32_1 = arith.constant 0 : i32
    return %c0_i32, %c0_i32_0 : i32, i32
  }
  func.func @transform_6(%arg0: i32, %arg1: memref<1xi32, #tpu.memory_space<smem>>) -> (i32, i32) {
    %c0_i32 = arith.constant 0 : i32
    %c0_i32_0 = arith.constant 0 : i32
    %c0_i32_1 = arith.constant 0 : i32
    return %c0_i32, %c0_i32_0 : i32, i32
  }
}

</mosaic_0001>

<bundles_post_ra>
// kernel: loss_fn.1
= control target key start
LH: loop header
LB: loop body
LE: loop exit
PB: predicated region body
PF: predicated region fallthrough
CT: control target
= control target key end

     0   :  { %14 = vsyncpa [#allocation5], 0  ;;  %s349_s26 = smov 2   ;;  %v350_v1 = vmov 0   ;;  %s512_s0 = inlined_call_operand.<no memory space> [shape: s32[1], index: 0, kind: input, shape index: {}]   ;;  %s513_s1 = inlined_call_operand.vmem [shape: f32[32,8], index: 1, kind: input, shape index: {}]   ;;  %s514_s2 = inlined_call_operand.vmem [shape: f32[8,4], index: 2, kind: input, shape index: {}]   ;;  %s515_s3 = inlined_call_operand.vmem [shape: f32[4,8], index: 3, kind: input, shape index: {}]   ;;  %s516_s4 = inlined_call_operand.vmem [shape: f32[4,8], index: 4, kind: input, shape index: {}]   ;;  %s517_s5 = inlined_call_operand.vmem [shape: f32[1,8], index: 5, kind: output, shape index: {0}]   ;;  %s518_s6 = inlined_call_operand.hbm [shape: f32[1,1], index: 6, kind: output, shape index: {1}]   ;;  %s519_s7 = inlined_call_operand.hbm [shape: f32[1,1], index: 7, kind: output, shape index: {2}]  }
   0x1   :  { %v99_v0 = vld [vmem:[%s514_s2] sm:$0xff]  ;;  %288 = vset.pattern.permute.xlu1 %v350_v1 }
   0x2   :  { %101 = vrot.lane.b32.xlu0 %v99_v0, %s349_s26 }
   0x3   :  { %15 = vsyncpa [#allocation7], 0  ;;  %115 = vperm.xlu1 %288, %v99_v0   ;;  %v351_v2 = vmov 2   ;;  %v352_v3 = vmov 1   ;;  %v353_v4 = vmov 3   ;;  %s354_s27 = smov 127   ;;  %v37_v26 = vlaneseq }
   0x4   :  { %290 = vset.pattern.permute.xlu0 %v351_v2  ;;  %v404_v9 = vld [vmem:[%s516_s4] sm:$0xf]  ;;  %v39_v31 = vstv %s512_s0  ;;  %v355_v35 = vmov 0.0   ;;  %vm28_vm1 = vcmask 57344   ;;  %v216_v39 = vld [vmem:[%s513_s1 + $0x8] sm:$0xff]  ;;  %v217_v41 = vld [vmem:[%s513_s1 + $0x10] sm:$0xff] }
   0x5   :  { %v46_v10 = vld [vmem:[%s515_s3] sm:$0xf]  ;;  %v54_v12 = vrot.slane %v404_v9, 2  ;;  %v63_v13 = vrot.slane %v404_v9, 6  ;;  %v38_v29 = vand.u32 127, %v37_v26  ;;  %v419_v33 = vshrl.u32 %v37_v26, 7 }
   0x6   :  { %v49_v11 = vrot.slane %v46_v10, 2  ;;  %v60_v18 = vrot.slane %v46_v10, 6  ;;  %v215_v38 = vld [vmem:[%s513_s1] sm:$0xff]  ;;  %v218_v42 = vld [vmem:[%s513_s1 + $0x18] sm:$0xff]  ;;  %v221_v44 = vmul.f32 %v216_v39, %v216_v39  ;;  %29 = vst.msk [vmem:[%s517_s5] sm:$0x1] %vm28_vm1, %v355_v35  ;;  %v222_v45 = vmul.f32 %v217_v41, %v217_v41 }
   0x7   :  { %289 = vset.pattern.permute.xlu1 %v352_v3  ;;  %v56_v15 = vadd.f32 %v54_v12, %v404_v9  ;;  %v413_v19 = vsub.f32 %v404_v9, %v63_v13  ;;  %vm421_vm0 = vcmp.lt.s32.totalorder %v38_v29, %v39_v31  ;;  %vm43_vm2 = vcmp.lt.s32.totalorder %v419_v33, %v39_v31  ;;  %p31_p0 = scmp.gt.s32.totalorder %s512_s0, 1  ;;  %p34_p1 = scmp.gt.s32.totalorder %s512_s0, 0 }
   0x8   :  { %124 = vperm.xlu1 %289, %v99_v0   ;;  %v51_v14 = vadd.f32 %v49_v11, %v46_v10  ;;  %v62_v21 = vsub.f32 %v46_v10, %v60_v18  ;;  %v273_v36 = vsel %vm421_vm0, 1.0, %v355_v35  ;;  %v220_v43 = vmul.f32 %v215_v38, %v215_v38  ;;  %vm192_vm4 = vmand %vm43_vm2, %vm421_vm0  ;;  %s356_s3 = smov [#allocation4]  }
   0x9   :  { %v57_v17 = vmul.f32 0.5, %v56_v15  ;;  %vm197_vm3 = vcmask 64512   ;;  %v223_v46 = vmul.f32 %v218_v42, %v218_v42  ;;  %v449_v50 = vsel %vm192_vm4, 1.0, %v355_v35  ;;  %s32_s24 = scalar_select %p31_p0, %s512_s0, 1 }
   0xa   :  { %v52_v16 = vmul.f32 0.5, %v51_v14  ;;  %v66_v23 = vsub.f32 %v62_v21, %v413_v19  ;;  %v225_v48 = vsel %vm197_vm3, %v220_v43, 0.0  ;;  %v226_v49 = vsel %vm197_vm3, %v221_v44, 0.0  ;;  %s35_s28 = scalar_select %p34_p1, 1, 0 }
   0xb   :  { %v227_v51 = vadd.f32 %v226_v49, %v225_v48  ;;  %v228_v52 = vsel %vm197_vm3, %v222_v45, 0.0  ;;  %v230_v53 = vsel %vm197_vm3, %v223_v46, 0.0  ;;  %v129_v3 = vsub.s32 1, %v419_v33  ;;  %s478_s25 = scvt.s32.f32 %s32_s24  ;;  %s249_s4 = sshll.u32 %s356_s3, 4  ;;  %s250_s4 = int_to_ptr.vmem [resolvable:$true] %s249_s4 }
   0xc   :  { %291 = vset.pattern.permute.xlu1 %v353_v4  ;;  %v58_v20 = vsub.f32 %v52_v16, %v57_v17  ;;  %v67_v24 = vand.u32 2147483647, %v66_v23  ;;  %v147_v4 = vsub.s32 3, %v419_v33  ;;  %v111_v26 = vrot.slane %v413_v19, 1  ;;  %s36_s29 = scvt.s32.f32 %s35_s28  ;;  %s301_s8 = scalar_lea.vmem %s250_s4, 16 }
   0xd   :  { %142 = vperm.xlu1 %291, %v99_v0   ;;  %v229_v54 = vadd.f32 %v228_v52, %v227_v51  ;;  %v219_v61 = vld [vmem:[%s517_s5] sm:$0x1]  ;;  %s93_s2 = smul.f32 4.0, %s478_s25  ;;  %vm97_vm5 = vcmask 0   ;;  %p302_p2 = scmp.ne.s32.totalorder %s250_s4, %s301_s8 }
   0xe   :  { %v59_v22 = vand.u32 2147483647, %v58_v20  ;;  %v73_v28 = vrot.slane %v67_v24, 2  ;;  %v76_v32 = vrot.slane %v67_v24, 3  ;;  %s305_s0 = scalar_lea.vmem %s250_s4, 32  ;;  %p306_p3 = scmp.lt.s32.totalorder %s250_s4, %s250_s4 }
   0xf   :  { %v231_v55 = vadd.f32 %v230_v53, %v229_v54  ;;  %p307_p4 = scmp.lt.s32.totalorder %s305_s0, %s301_s8 }
  0x10   :  { %v69_v25 = vrot.slane %v59_v22, 1 }
  0x11   :  { %292 = vset.pattern.permute.xlu1 %v351_v2  ;;  %v232_v56 = vrot.slane %v231_v55, 4  ;;  %v120_v2 = vsub.s32 0, %v419_v33  ;;  %p308_p5 = por %p307_p4, %p306_p3 }
  0x12   :  { %v71_v27 = vadd.f32 %v69_v25, %v59_v22 }
  0x13   :  { %v233_v57 = vadd.f32 %v232_v56, %v231_v55  ;;  %p309_p6 = pnand %p308_p5, %p302_p2 }
  0x14   :  { %v75_v30 = vadd.f32 %v73_v28, %v71_v27 }
  0x15   :  { %v234_v58 = vrot.slane %v233_v57, 2 }
  0x16   :  { %v78_v37 = vadd.f32 %v76_v32, %v75_v30 }
  0x17   :  { %v235_v59 = vadd.f32 %v234_v58, %v233_v57 }
  0x18   :  { %v79_v40 = vmul.f32 %v273_v36, %v78_v37 }
  0x19   :  { %v236_v60 = vrot.slane %v235_v59, 1 }
  0x1a   :  { %v80_v47 = vsel %vm28_vm1, %v79_v40, 0.0 }
  0x1b   :  { %v237_v62 = vadd.f32 %v236_v60, %v235_v59 }
  0x1d   :  { %v238_v63 = vadd.f32 %v237_v62, %v219_v61  ;;  %v91_v61 = vstv %s36_s29 }
  0x1f   :  { %240 = vst.msk [vmem:[%s517_s5] sm:$0x1] %vm28_vm1, %v238_v63 }
  0x74   :  { %v102_v5 = vpop.permute.xlu0 %101 }
  0x75   :  { %v104_v6 = vsub.f32 %v99_v0, %v102_v5  ;;  %v138_v5 = vsub.s32 2, %v419_v33 }
  0x77   :  { %106 = vrot.lane.b32.xlu0 %v104_v6, %s354_s27  ;;  %v139_v10 = vrot.slane %v404_v9, %v138_v5 }
  0x7b   :  { %133 = vperm.xlu0 %290, %v99_v0  }
  0x82   :  { %v116_v0 = vpop.permute.xlu1 %115 }
  0x87   :  { %v125_v1 = vpop.permute.xlu1 %124 }
  0x8c   :  { %v143_v11 = vpop.permute.xlu1 %142 }
  0x9a   :  { %81 = vadd.xlane.f32.xlu0 %v80_v47 }
  0xe9   :  { %v107_v7 = vpop.permute.xlu0 %106 }
  0xea   :  { %v109_v8 = vmul.f32 %v107_v7, %v104_v6  ;;  %v121_v6 = vrot.slane %v404_v9, %v120_v2  ;;  %v130_v7 = vrot.slane %v404_v9, %v129_v3 }
  0xec   :  { %157 = vperm.xlu1 %292, %v109_v8   ;;  %v148_v8 = vrot.slane %v404_v9, %v147_v4  ;;  %v172_v13 = vmin.f32 %v116_v0, %v121_v6  ;;  %v173_v14 = vmin.f32 %v125_v1, %v130_v7  ;;  %v122_v20 = vmax.f32 %v116_v0, %v121_v6 }
  0xed   :  { %v131_v21 = vmax.f32 %v125_v1, %v130_v7  ;;  %v113_v9 = vmul.f32 %v111_v26, %v413_v19 }
  0xee   :  { %v175_v15 = vmax.f32 %v143_v11, %v148_v8  ;;  %v149_v22 = vmin.f32 %v143_v11, %v148_v8 }
  0xef   :  { %v163_v33 = vrot.slane %v113_v9, %v138_v5 }
  0xf0   :  { %v178_v17 = vsub.f32 %v175_v15, %v173_v14  ;;  %v152_v27 = vsub.f32 %v149_v22, %v131_v21 }
  0xf2   :  { %v179_v23 = vmax.f32 %v178_v17, 0.0  ;;  %v153_v30 = vmax.f32 %v152_v27, 0.0 }
  0xfa   :  { %v134_v12 = vpop.permute.xlu0 %133 }
  0xfb   :  { %v174_v16 = vmax.f32 %v134_v12, %v139_v10  ;;  %v140_v24 = vmin.f32 %v134_v12, %v139_v10 }
  0xfd   :  { %v176_v18 = vsub.f32 %v174_v16, %v172_v13  ;;  %v150_v28 = vsub.f32 %v140_v24, %v122_v20 }
  0xff   :  { %v177_v25 = vmax.f32 %v176_v18, 0.0  ;;  %v151_v31 = vmax.f32 %v150_v28, 0.0 }
 0x101   :  { %v180_v29 = vmul.f32 %v179_v23, %v177_v25  ;;  %v154_v35 = vmul.f32 %v153_v30, %v151_v31 }
 0x103   :  { %v182_v32 = vadd.f32 1e-08, %v180_v29 }
 0x105   :  { %293 = vrcp.f32 %v182_v32 }
 0x10f   :  { %v294_v39 = vpop.eup %293 }
 0x110   :  { %v184_v40 = vmul.f32 %v294_v39, %v182_v32 }
 0x112   :  { %v185_v43 = vsub.f32 2.0, %v184_v40 }
 0x114   :  { %v186_v19 = vmul.f32 %v294_v39, %v185_v43 }
 0x127   :  { %v82_v54 = vpop.xlane.xlu0 %81 }
 0x128   :  { %v83_v55 = vrot.slane %v82_v54, 4 }
 0x12a   :  { %v84_v56 = vadd.f32 %v83_v55, %v82_v54 }
 0x12c   :  { %v85_v57 = vrot.slane %v84_v56, 2 }
 0x12e   :  { %v86_v58 = vadd.f32 %v85_v57, %v84_v56 }
 0x130   :  { %v87_v59 = vrot.slane %v86_v58, 1 }
 0x132   :  { %v88_v60 = vadd.f32 %v87_v59, %v86_v58 }
 0x134   :  { %275 = vpush %v88_v60 }
 0x165   :  { %s276_s30 = spop %275 }
 0x166   :  { %v90_v62 = vstv %s276_s30 }
 0x167   :  { %v92_v0 = vmul.f32 %v91_v61, %v90_v62 }
 0x16b   :  { %v158_v34 = vpop.permute.xlu1 %157 }
 0x16c   :  { %v164_v36 = vadd.f32 %v163_v33, %v158_v34 }
 0x16e   :  { %v165_v37 = vsub.f32 %v164_v36, %v154_v35 }
 0x170   :  { %v166_v38 = vadd.f32 1e-08, %v165_v37  ;;  %v181_v45 = vsub.f32 %v180_v29, %v165_v37 }
 0x172   :  { %295 = vrcp.f32 %v166_v38  ;;  %v187_v48 = vmul.f32 %v186_v19, %v181_v45 }
 0x17c   :  { %v296_v41 = vpop.eup %295 }
 0x17d   :  { %v168_v42 = vmul.f32 %v296_v41, %v166_v38 }
 0x17f   :  { %v169_v44 = vsub.f32 2.0, %v168_v42 }
 0x181   :  { %v170_v46 = vmul.f32 %v296_v41, %v169_v44 }
 0x183   :  { %v171_v47 = vmul.f32 %v170_v46, %v154_v35 }
 0x185   :  { %v188_v49 = vsub.f32 %v171_v47, %v187_v48 }
 0x187   :  { %v195_v51 = vsub.f32 1.0, %v188_v49 }
 0x189   :  { %v196_v52 = vmul.f32 %v449_v50, %v195_v51  ;;  %v94_v50 = vstv %s93_s2 }
 0x18a   :  { %297 = vrcp.f32 %v94_v50 }
 0x18b   :  { %v198_v53 = vsel %vm197_vm3, %v196_v52, 0.0 }
 0x18c   :  { %199 = vadd.xlane.f32.xlu1 %v198_v53 }
 0x194   :  { %v298_v63 = vpop.eup %297 }
 0x195   :  { %v96_v1 = vmul.f32 %v298_v63, %v92_v0 }
 0x197   :  { %98 = vst.msk [vmem:[#allocation4] sm:$0x1] %vm97_vm5, %v96_v1 }
 0x198   :  { %312 = shalt.err (!%p309_p6)
}
 0x199   :  { %s313_s11 = scalar_lea.hbm %s518_s6, 16 }
 0x19a   :  { %p314_p7 = scmp.ne.s32.totalorder %s518_s6, %s313_s11  ;;  %p317_p8 = scmp.lt.u32.totalorder %s313_s11, %s518_s6 }
 0x19c   :  { %p319_p9 = pnand %p317_p8, %p314_p7 }
 0x19e   :  { %322 = shalt.err (!%p319_p9)
}
 0x19f   :  { %252 = dma.vmem_to_hbm [thread:$0]  %s250_s4, 16, %s518_s6, [#allocation5]  }
 0x1a0   :  { %s210_s1 = smul.f32 %s478_s25, %s478_s25  ;;  %s357_s19 = smov [#allocation6]  }
 0x1a1   :  { %s259_s20 = sshll.u32 %s357_s19, 4  ;;  %s260_s20 = int_to_ptr.vmem [resolvable:$true] %s259_s20 }
 0x1a2   :  { %v211_v10 = vstv %s210_s1  ;;  %s323_s6 = scalar_lea.vmem %s260_s20, 16  ;;  %s327_s5 = scalar_lea.vmem %s260_s20, 32 }
 0x1a3   :  { %299 = vrcp.f32 %v211_v10  ;;  %p324_p10 = scmp.ne.s32.totalorder %s260_s20, %s323_s6  ;;  %p328_p11 = scmp.lt.s32.totalorder %s260_s20, %s260_s20 }
 0x1a4   :  { %p329_p12 = scmp.lt.s32.totalorder %s327_s5, %s323_s6 }
 0x1a6   :  { %p330_p13 = por %p329_p12, %p328_p11 }
 0x1a8   :  { %p331_p0 = pnand %p330_p13, %p324_p10 }
 0x1ad   :  { %v300_v11 = vpop.eup %299 }
 0x219   :  { %v200_v2 = vpop.xlane.xlu1 %199 }
 0x21a   :  { %v201_v3 = vrot.slane %v200_v2, 4 }
 0x21c   :  { %v202_v4 = vadd.f32 %v201_v3, %v200_v2 }
 0x21e   :  { %v203_v5 = vrot.slane %v202_v4, 2 }
 0x220   :  { %v204_v6 = vadd.f32 %v203_v5, %v202_v4 }
 0x222   :  { %v205_v7 = vrot.slane %v204_v6, 1 }
 0x224   :  { %v206_v8 = vadd.f32 %v205_v7, %v204_v6 }
 0x226   :  { %277 = vpush %v206_v8 }
 0x257   :  { %s278_s18 = spop %277 }
 0x258   :  { %v208_v12 = vstv %s278_s18 }
 0x259   :  { %v209_v13 = vmul.f32 %v208_v12, %v91_v61 }
 0x25b   :  { %v213_v14 = vmul.f32 %v300_v11, %v209_v13 }
 0x25d   :  { %214 = vst.msk [vmem:[#allocation6] sm:$0x1] %vm97_vm5, %v213_v14 }
 0x25e   :  { %334 = shalt.err (!%p331_p0)
}
 0x25f   :  { %s335_s23 = scalar_lea.hbm %s519_s7, 16 }
 0x260   :  { %p336_p1 = scmp.ne.s32.totalorder %s519_s7, %s335_s23  ;;  %p339_p2 = scmp.lt.u32.totalorder %s335_s23, %s519_s7 }
 0x262   :  { %p341_p3 = pnand %p339_p2, %p336_p1 }
 0x264   :  { %344 = shalt.err (!%p341_p3)
}
 0x265   :  { %262 = dma.vmem_to_hbm [thread:$0]  %s260_s20, 16, %s519_s7, [#allocation7]  }
 0x266   :  { %345 = dma.done.wait [#allocation5], 16  }
 0x267   :  { %346 = vsyncadd [#allocation5], 4294967280 }
 0x268   :  { %347 = dma.done.wait [#allocation7], 16  }
 0x269   :  { %348 = vsyncadd [#allocation7], 4294967280 }
 0x26a   :  { %271 = vsyncpa [#allocation5], 1 }
 0x26b   :  { %272 = vsyncpa [#allocation7], 1 }

</bundles_post_ra>
